<compile_context>
chip_gen: v7x
topology: tpu7x:2x2x1
jax: 0.10.0
libtpu: 0.0.40
codegen_flags: <defaults>
</compile_context>

<pallas_src>
import jax
import jax.numpy as jnp
from jax.experimental import pallas as pl
from jax.experimental.pallas import tpu as pltpu

_LANE = 128  # lane width; the 1-wide head is padded to this for dense stores


def make_critic_kernel(n_hidden: int, batch: int, compute_dtype=jnp.float32):
    """Kernel closure.

    Ref order:
      state, action, w_in, b_in, gamma, beta,
      w_h0_state, w_h0_action, b_h0,
      (w_h, b_h) * (n_hidden - 1),
      w_out_pad, b_out_pad, out_ref
    """
    inv_b = 1.0 / float(batch)
    f32 = jnp.float32

    def kernel(*refs):
        (state_ref, action_ref, w_in, b_in, gamma, beta,
         w_h0_s, w_h0_a, b_h0) = refs[:9]
        n_rest = n_hidden - 1
        rest = refs[9:9 + 2 * n_rest]
        w_out = refs[9 + 2 * n_rest]
        b_out = refs[10 + 2 * n_rest]
        out_ref = refs[11 + 2 * n_rest]

        # ---- input linear + relu (MXU, f32 accumulation) ----
        x0 = jnp.dot(state_ref[...].astype(compute_dtype), w_in[...],
                     preferred_element_type=f32) + b_in[...].astype(f32)
        x0 = jnp.maximum(x0, 0.0)

        # ---- BatchNorm1d, training mode (batch mean, biased variance) ----
        # Cross-sublane reductions land on the MXU as (1,B) @ (B,H) matmuls
        # instead of serializing on the XLU; the affine transform is folded
        # into one per-feature scale to minimize per-element VPU work.
        ones_row = jnp.ones((1, batch), f32)
        mean = jnp.dot(ones_row, x0, preferred_element_type=f32) * inv_b
        centered = x0 - mean
        var = jnp.dot(ones_row, centered * centered,
                      preferred_element_type=f32) * inv_b
        scale = jax.lax.rsqrt(var + 1e-5) * gamma[...].astype(f32)
        x0 = centered * scale + beta[...].astype(f32)

        # ---- first hidden layer: concat(x0, action) folded into two matmuls
        # on pre-split, tile-aligned weights (no in-kernel ref slicing) ----
        x = (jnp.dot(x0.astype(compute_dtype), w_h0_s[...],
                     preferred_element_type=f32)
             + jnp.dot(action_ref[...].astype(compute_dtype), w_h0_a[...],
                       preferred_element_type=f32)
             + b_h0[...].astype(f32))
        x = jnp.maximum(x, 0.0)

        # ---- remaining hidden layers ----
        for i in range(n_rest):
            w, b = rest[2 * i], rest[2 * i + 1]
            x = jnp.maximum(
                jnp.dot(x.astype(compute_dtype), w[...],
                        preferred_element_type=f32) + b[...].astype(f32),
                0.0)

        # ---- output head, padded to a lane-dense (B, _LANE) store ----
        out_ref[...] = (jnp.dot(x.astype(compute_dtype), w_out[...],
                                preferred_element_type=f32)
                        + b_out[...].astype(f32))

    return kernel


def _critic_forward_impl(state, action, params):
    if state.ndim == 1:
        state = state[None, :]
    if action.ndim == 1:
        action = action[None, :]

    B = state.shape[0]
    S = state.shape[1]
    A = action.shape[1]
    h0 = params["w_in"].shape[1]
    hidden = params["hidden"]
    n_hidden = len(hidden)
    w_dtype = params["w_in"].dtype

    # Split first hidden weight so the fused concat uses two clean operands.
    w_h0, b_h0 = hidden[0]
    w_h0_s = w_h0[:h0, :]
    w_h0_a = w_h0[h0:, :]

    # Pad the 1-wide head to _LANE zero columns -> unmasked lane-dense store;
    # slice the real column back out in the wrapper.
    d_last = params["w_out"].shape[0]
    w_out_pad = jnp.zeros((d_last, _LANE), w_dtype).at[:, :1].set(
        params["w_out"].astype(w_dtype))
    b_out_pad = jnp.zeros((1, _LANE), jnp.float32).at[:, :1].set(
        params["b_out"].astype(jnp.float32))

    args = [state, action, params["w_in"], params["b_in"],
            params["gamma"], params["beta"], w_h0_s, w_h0_a, b_h0]
    for w, b in hidden[1:]:
        args += [w, b]
    args += [w_out_pad, b_out_pad]

    # Advisory cost estimate so XLA schedules/overlaps the custom call well.
    h1 = w_h0.shape[1]
    flops = 2 * B * S * h0          # input linear
    flops += 4 * B * h0             # BN mean + var matmuls
    flops += 2 * B * (h0 + A) * h1  # first hidden (split concat)
    for w, _ in hidden[1:]:
        flops += 2 * B * w.shape[0] * w.shape[1]
    flops += 2 * B * d_last * _LANE  # padded head
    bytes_accessed = sum(int(a.size) * a.dtype.itemsize for a in args)
    bytes_accessed += B * _LANE * 4

    kernel = make_critic_kernel(n_hidden, B, compute_dtype=w_dtype)
    out = pl.pallas_call(
        kernel,
        out_shape=jax.ShapeDtypeStruct((B, _LANE), jnp.float32),
        in_specs=[pl.BlockSpec(memory_space=pltpu.MemorySpace.VMEM)
                  for _ in args],
        out_specs=pl.BlockSpec(memory_space=pltpu.MemorySpace.VMEM),
        cost_estimate=pl.CostEstimate(flops=flops,
                                      transcendentals=h0,
                                      bytes_accessed=bytes_accessed),
        compiler_params=pltpu.CompilerParams(
            vmem_limit_bytes=32 * 1024 * 1024),
    )(*args)
    return out[:, :1]


# jit the wrapper: fuses weight padding/splitting with the call and removes
# per-call Python dispatch overhead (the kernel itself is microsecond-scale).
critic_forward = jax.jit(_critic_forward_impl)


def _linear_init(key, fan_in, fan_out, bound=None, weight_dtype=jnp.float32):
    """Deterministic uniform(-1/sqrt(fan_in), 1/sqrt(fan_in)) init (DDPG)."""
    if bound is None:
        bound = 1.0 / jnp.sqrt(float(fan_in))
    kw, kb = jax.random.split(key)
    w = jax.random.uniform(kw, (fan_in, fan_out), jnp.float32, -bound, bound)
    b = jax.random.uniform(kb, (1, fan_out), jnp.float32, -bound, bound)
    return w.astype(weight_dtype), b  # biases stay f32


def init_critic_params(key, state_size, action_size, hidden_units,
                       weight_dtype=jnp.float32):
    """weight_dtype=jnp.bfloat16 halves weight VMEM/DMA on v6e/v7x."""
    units = list(hidden_units)
    keys = jax.random.split(key, 2 + len(units))

    params = {}
    params["w_in"], params["b_in"] = _linear_init(
        keys[0], state_size, units[0], weight_dtype=weight_dtype)
    # BatchNorm1d affine params (default init: gamma=1, beta=0), kept in f32.
    params["gamma"] = jnp.ones((1, units[0]), jnp.float32)
    params["beta"] = jnp.zeros((1, units[0]), jnp.float32)

    units_cat = list(units)
    units_cat[0] += action_size
    params["hidden"] = []
    for i, (d_in, d_out) in enumerate(zip(units_cat[:-1], units_cat[1:])):
        w, b = _linear_init(keys[1 + i], d_in, d_out,
                            weight_dtype=weight_dtype)
        params["hidden"].append((w, b))

    # output layer init a la DDPG: uniform(-3e-3, 3e-3)
    params["w_out"], params["b_out"] = _linear_init(
        keys[-1], units_cat[-1], 1, bound=3e-3, weight_dtype=weight_dtype)
    return params


def critic_reference(state, action, params):
    """Pure-JAX reference for correctness checking (f32 everywhere)."""
    f32 = jnp.float32
    x0 = jnp.maximum(state @ params["w_in"].astype(f32) + params["b_in"], 0.0)
    mean = jnp.mean(x0, axis=0, keepdims=True)
    var = jnp.mean((x0 - mean) ** 2, axis=0, keepdims=True)
    x0 = ((x0 - mean) * jax.lax.rsqrt(var + 1e-5)
          * params["gamma"] + params["beta"])
    x = jnp.concatenate([x0, action], axis=1)
    for w, b in params["hidden"]:
        x = jnp.maximum(x @ w.astype(f32) + b, 0.0)
    return x @ params["w_out"].astype(f32) + params["b_out"]


if __name__ == "__main__":
    # Small, module-consistent shapes.  (For throughput, callers should scale
    # batch toward 128 on v5e / 256 on v6e-v7x; semantics are unchanged.
    # TODO(synk): training-mode BatchNorm needs whole-batch stats, so the
    # batch is not grid-tiled; very large batches would need a two-pass
    # variant.)
    batch = 8
    state_size = 32
    action_size = 8

    root = jax.random.PRNGKey(0)
    k_params, k_state, k_action, k_params2 = jax.random.split(root, 4)

    state = jax.random.normal(k_state, (batch, state_size), jnp.float32)
    action = jax.random.normal(k_action, (batch, action_size), jnp.float32)

    # Config 1: single hidden layer after the concat (hidden_units=[64, 32]).
    params = init_critic_params(k_params, state_size, action_size,
                                [64, 32], weight_dtype=jnp.float32)
    out = jax.block_until_ready(critic_forward(state, action, params))
    ref = critic_reference(state, action, params)
    assert out.shape == (batch, 1), out.shape
    assert jnp.allclose(out, ref, atol=1e-4, rtol=1e-4), (out, ref)

    # Config 2: deeper net to exercise the extra-hidden-layer loop path.
    params2 = init_critic_params(k_params2, state_size, action_size,
                                 [64, 64, 32], weight_dtype=jnp.float32)
    out2 = jax.block_until_ready(critic_forward(state, action, params2))
    ref2 = critic_reference(state, action, params2)
    assert out2.shape == (batch, 1), out2.shape
    assert jnp.allclose(out2, ref2, atol=1e-4, rtol=1e-4), (out2, ref2)

    print("KERNEL_OK")
</pallas_src>

<mosaic_0001>
module attributes {stable_mosaic.version = 11 : i64} {
  func.func @kernel(%arg0: memref<8x32xf32, #tpu.memory_space<vmem>>, %arg1: memref<8x8xf32, #tpu.memory_space<vmem>>, %arg2: memref<32x64xf32, #tpu.memory_space<vmem>>, %arg3: memref<1x64xf32, #tpu.memory_space<vmem>>, %arg4: memref<1x64xf32, #tpu.memory_space<vmem>>, %arg5: memref<1x64xf32, #tpu.memory_space<vmem>>, %arg6: memref<64x32xf32, #tpu.memory_space<vmem>>, %arg7: memref<8x32xf32, #tpu.memory_space<vmem>>, %arg8: memref<1x32xf32, #tpu.memory_space<vmem>>, %arg9: memref<32x128xf32, #tpu.memory_space<vmem>>, %arg10: memref<1x128xf32, #tpu.memory_space<vmem>>, %arg11: memref<8x128xf32, #tpu.memory_space<vmem>>) attributes {dimension_semantics = [], scalar_prefetch = 0 : i64, scratch_operands = 0 : i64, tpu.core_type = #tpu.core_type<tc>} {
    %c0 = arith.constant 0 : index
    %c0_0 = arith.constant 0 : index
    %0 = vector.load %arg0[%c0, %c0_0] : memref<8x32xf32, #tpu.memory_space<vmem>>, vector<8x32xf32>
    %c0_1 = arith.constant 0 : index
    %c0_2 = arith.constant 0 : index
    %1 = vector.load %arg2[%c0_1, %c0_2] : memref<32x64xf32, #tpu.memory_space<vmem>>, vector<32x64xf32>
    %cst = arith.constant dense<0.000000e+00> : vector<8x64xf32>
    %2 = tpu.matmul %0, %1, %cst {dimension_numbers = #tpu.dot_dimension_numbers<[1], [0], [0], [1], [0, 0, 1, 1], [], []>} : vector<8x32xf32>, vector<32x64xf32>, vector<8x64xf32> -> vector<8x64xf32>
    %c0_3 = arith.constant 0 : index
    %c0_4 = arith.constant 0 : index
    %3 = vector.load %arg3[%c0_3, %c0_4] : memref<1x64xf32, #tpu.memory_space<vmem>>, vector<1x64xf32>
    %4 = vector.broadcast %3 : vector<1x64xf32> to vector<8x64xf32>
    %5 = arith.addf %2, %4 : vector<8x64xf32>
    %cst_5 = arith.constant 0.000000e+00 : f32
    %6 = vector.broadcast %cst_5 : f32 to vector<8x64xf32>
    %7 = arith.maximumf %5, %6 : vector<8x64xf32>
    %cst_6 = arith.constant 1.000000e+00 : f32
    %8 = vector.broadcast %cst_6 : f32 to vector<1x8xf32>
    %cst_7 = arith.constant dense<0.000000e+00> : vector<1x64xf32>
    %9 = tpu.matmul %8, %7, %cst_7 {dimension_numbers = #tpu.dot_dimension_numbers<[1], [0], [0], [1], [0, 0, 1, 1], [], []>} : vector<1x8xf32>, vector<8x64xf32>, vector<1x64xf32> -> vector<1x64xf32>
    %cst_8 = arith.constant 1.250000e-01 : f32
    %10 = vector.broadcast %cst_8 : f32 to vector<1x64xf32>
    %11 = arith.mulf %9, %10 : vector<1x64xf32>
    %12 = vector.broadcast %11 : vector<1x64xf32> to vector<8x64xf32>
    %13 = arith.subf %7, %12 : vector<8x64xf32>
    %14 = arith.mulf %13, %13 : vector<8x64xf32>
    %cst_9 = arith.constant dense<0.000000e+00> : vector<1x64xf32>
    %15 = tpu.matmul %8, %14, %cst_9 {dimension_numbers = #tpu.dot_dimension_numbers<[1], [0], [0], [1], [0, 0, 1, 1], [], []>} : vector<1x8xf32>, vector<8x64xf32>, vector<1x64xf32> -> vector<1x64xf32>
    %cst_10 = arith.constant 1.250000e-01 : f32
    %16 = vector.broadcast %cst_10 : f32 to vector<1x64xf32>
    %17 = arith.mulf %15, %16 : vector<1x64xf32>
    %cst_11 = arith.constant 9.99999974E-6 : f32
    %18 = vector.broadcast %cst_11 : f32 to vector<1x64xf32>
    %19 = arith.addf %17, %18 : vector<1x64xf32>
    %20 = math.rsqrt %19 : vector<1x64xf32>
    %c0_12 = arith.constant 0 : index
    %c0_13 = arith.constant 0 : index
    %21 = vector.load %arg4[%c0_12, %c0_13] : memref<1x64xf32, #tpu.memory_space<vmem>>, vector<1x64xf32>
    %22 = arith.mulf %20, %21 : vector<1x64xf32>
    %23 = vector.broadcast %22 : vector<1x64xf32> to vector<8x64xf32>
    %24 = arith.mulf %13, %23 : vector<8x64xf32>
    %c0_14 = arith.constant 0 : index
    %c0_15 = arith.constant 0 : index
    %25 = vector.load %arg5[%c0_14, %c0_15] : memref<1x64xf32, #tpu.memory_space<vmem>>, vector<1x64xf32>
    %26 = vector.broadcast %25 : vector<1x64xf32> to vector<8x64xf32>
    %27 = arith.addf %24, %26 : vector<8x64xf32>
    %c0_16 = arith.constant 0 : index
    %c0_17 = arith.constant 0 : index
    %28 = vector.load %arg6[%c0_16, %c0_17] : memref<64x32xf32, #tpu.memory_space<vmem>>, vector<64x32xf32>
    %cst_18 = arith.constant dense<0.000000e+00> : vector<8x32xf32>
    %29 = tpu.matmul %27, %28, %cst_18 {dimension_numbers = #tpu.dot_dimension_numbers<[1], [0], [0], [1], [0, 0, 1, 1], [], []>} : vector<8x64xf32>, vector<64x32xf32>, vector<8x32xf32> -> vector<8x32xf32>
    %c0_19 = arith.constant 0 : index
    %c0_20 = arith.constant 0 : index
    %30 = vector.load %arg1[%c0_19, %c0_20] : memref<8x8xf32, #tpu.memory_space<vmem>>, vector<8x8xf32>
    %c0_21 = arith.constant 0 : index
    %c0_22 = arith.constant 0 : index
    %31 = vector.load %arg7[%c0_21, %c0_22] : memref<8x32xf32, #tpu.memory_space<vmem>>, vector<8x32xf32>
    %cst_23 = arith.constant dense<0.000000e+00> : vector<8x32xf32>
    %32 = tpu.matmul %30, %31, %cst_23 {dimension_numbers = #tpu.dot_dimension_numbers<[1], [0], [0], [1], [0, 0, 1, 1], [], []>} : vector<8x8xf32>, vector<8x32xf32>, vector<8x32xf32> -> vector<8x32xf32>
    %33 = arith.addf %29, %32 : vector<8x32xf32>
    %c0_24 = arith.constant 0 : index
    %c0_25 = arith.constant 0 : index
    %34 = vector.load %arg8[%c0_24, %c0_25] : memref<1x32xf32, #tpu.memory_space<vmem>>, vector<1x32xf32>
    %35 = vector.broadcast %34 : vector<1x32xf32> to vector<8x32xf32>
    %36 = arith.addf %33, %35 : vector<8x32xf32>
    %cst_26 = arith.constant 0.000000e+00 : f32
    %37 = vector.broadcast %cst_26 : f32 to vector<8x32xf32>
    %38 = arith.maximumf %36, %37 : vector<8x32xf32>
    %c0_27 = arith.constant 0 : index
    %c0_28 = arith.constant 0 : index
    %39 = vector.load %arg9[%c0_27, %c0_28] : memref<32x128xf32, #tpu.memory_space<vmem>>, vector<32x128xf32>
    %cst_29 = arith.constant dense<0.000000e+00> : vector<8x128xf32>
    %40 = tpu.matmul %38, %39, %cst_29 {dimension_numbers = #tpu.dot_dimension_numbers<[1], [0], [0], [1], [0, 0, 1, 1], [], []>} : vector<8x32xf32>, vector<32x128xf32>, vector<8x128xf32> -> vector<8x128xf32>
    %c0_30 = arith.constant 0 : index
    %c0_31 = arith.constant 0 : index
    %41 = vector.load %arg10[%c0_30, %c0_31] : memref<1x128xf32, #tpu.memory_space<vmem>>, vector<1x128xf32>
    %42 = vector.broadcast %41 : vector<1x128xf32> to vector<8x128xf32>
    %43 = arith.addf %40, %42 : vector<8x128xf32>
    %c0_32 = arith.constant 0 : index
    %c0_33 = arith.constant 0 : index
    %44 = vector.load %arg11[%c0_32, %c0_33] : memref<8x128xf32, #tpu.memory_space<vmem>>, vector<8x128xf32>
    tpu.vector_store %arg11[%c0_32, %c0_33], %43 {strides = array<i32>} : memref<8x128xf32, #tpu.memory_space<vmem>>, vector<8x128xf32>,
    return
  }
}

</mosaic_0001>

<bundles_post_ra>
// kernel: _critic_forward_impl.1
= control target key start
LH: loop header
LB: loop body
LE: loop exit
PB: predicated region body
PF: predicated region fallthrough
CT: control target
= control target key end

     0   :  { %v670_v0 = vmov 0.0|0.0   ;;  %vm671_vm0 = vmmov 0   ;;  %v672_v4 = vmov 0.0   ;;  %vm50_vm1 = vcmask 261120   ;;  %s837_s2 = inlined_call_operand.vmem [shape: f32[32,64], index: 2, kind: input, shape index: {}]   ;;  %s838_s0 = inlined_call_operand.vmem [shape: f32[8,32], index: 0, kind: input, shape index: {}]   ;;  %s839_s3 = inlined_call_operand.vmem [shape: f32[1,64], index: 3, kind: input, shape index: {}]   ;;  %s840_s6 = inlined_call_operand.vmem [shape: f32[64,32], index: 6, kind: input, shape index: {}]   ;;  %s841_s7 = inlined_call_operand.vmem [shape: f32[8,32], index: 7, kind: input, shape index: {}]   ;;  %s842_s1 = inlined_call_operand.vmem [shape: f32[8,8], index: 1, kind: input, shape index: {}]   ;;  %s843_s4 = inlined_call_operand.vmem [shape: f32[1,64], index: 4, kind: input, shape index: {}]   ;;  %s844_s5 = inlined_call_operand.vmem [shape: f32[1,64], index: 5, kind: input, shape index: {}]   ;;  %s845_s9 = inlined_call_operand.vmem [shape: f32[32,128], index: 9, kind: input, shape index: {}]   ;;  %s846_s8 = inlined_call_operand.vmem [shape: f32[1,32], index: 8, kind: input, shape index: {}]   ;;  %s847_s10 = inlined_call_operand.vmem [shape: f32[1,128], index: 10, kind: input, shape index: {}]   ;;  %s848_s11 = inlined_call_operand.vmem [shape: f32[8,128], index: 11, kind: output, shape index: {}]  }
   0x1   :  { %640 = vmatprep.subr.bf16.mxu0 %v670_v0  ;;  %v39_v1 = vld [vmem:[%s837_s2] sm:$0xff]  ;;  %v40_v2 = vld [vmem:[%s837_s2 + $0x8] sm:$0xff]  ;;  %v41_v3 = vld [vmem:[%s837_s2 + $0x10] sm:$0xff]  ;;  %592 = vmatprep.mubr.msk.f32.mxu0 %vm671_vm0, %v672_v4  ;;  %vm125_vm2 = vcmask 64512   ;;  %v673_v14 = vmov 1.0   ;;  %v200_v15 = vlaneseq  ;;  %vm377_vm3 = vcmask 523264  }
   0x2   :  { %v641_v5 = vpack.c.bf16 %v40_v2, %v39_v1  ;;  %v42_v6 = vld [vmem:[%s837_s2 + $0x18] sm:$0xff]  ;;  %595 = vmatprep.subr.mxu1 %v672_v4  ;;  %597 = vmatprep.mubr.msk.f32.mxu1 %vm671_vm0, %v672_v4  ;;  %v38_v8 = vld [vmem:[%s838_s0] sm:$0xff]  ;;  %v295_v25 = vld [vmem:[%s840_s6 + $0x8] sm:$0xff] }
   0x3   :  { %v644_v7 = vpack.c.bf16 %v42_v6, %v41_v3  ;;  %v549_v9 = vld [vmem:[%s839_s3] ss:$0 sm:$0xff]  ;;  %v201_v16 = vshrl.u32 %v200_v15, 7  ;;  %v296_v27 = vld [vmem:[%s840_s6 + $0x10] sm:$0xff]  ;;  %v297_v28 = vld [vmem:[%s840_s6 + $0x18] sm:$0xff] }
   0x4   :  { %642 = vmatpush3.bf16.msra.mxu0 %v641_v5  ;;  %v294_v24 = vld [vmem:[%s840_s6] sm:$0xff]  ;;  %v650_v29 = vpack.c.bf16 %v297_v28, %v296_v27  ;;  %v299_v31 = vld [vmem:[%s840_s6 + $0x28] sm:$0xff]  ;;  %v300_v33 = vld [vmem:[%s840_s6 + $0x30] sm:$0xff] }
   0x5   :  { %643 = vmatprep.subr.bf16.mxu0 %v670_v0  ;;  %v202_v17 = vsub.s32 0, %v201_v16  ;;  %v647_v26 = vpack.c.bf16 %v295_v25, %v294_v24  ;;  %v298_v30 = vld [vmem:[%s840_s6 + $0x20] sm:$0xff]  ;;  %v301_v34 = vld [vmem:[%s840_s6 + $0x38] sm:$0xff]  ;;  %v461_v51 = vld [vmem:[%s845_s9 + $0x8] sm:$0xff] }
   0x6   :  { %v653_v32 = vpack.c.bf16 %v299_v31, %v298_v30  ;;  %v656_v35 = vpack.c.bf16 %v301_v34, %v300_v33  ;;  %v303_v36 = vld [vmem:[%s841_s7] sm:$0xff]  ;;  %v462_v54 = vld [vmem:[%s845_s9 + $0x10] sm:$0xff]  ;;  %v463_v55 = vld [vmem:[%s845_s9 + $0x18] sm:$0xff] }
   0x7   :  { %v302_v37 = vld [vmem:[%s842_s1] sm:$0xff]  ;;  %v662_v56 = vpack.c.bf16 %v463_v55, %v462_v54 }
   0x8   :  { %645 = vmatpush3.bf16.msra.mxu0 %v644_v7  ;;  %v279_v42 = vld [vmem:[%s843_s4] sm:$0x1] }
   0x9   :  { %646 = vmatprep.subr.bf16.mxu0 %v670_v0  ;;  %v553_v46 = vld [vmem:[%s844_s5] ss:$0 sm:$0xff] }
   0xa   :  { %v460_v50 = vld [vmem:[%s845_s9] sm:$0xff] }
   0xb   :  { %593 = vmatmul.mubr.msk.f32.vlgmr.msra.gmra.mrb[0].mxu0 %vm50_vm1, %v38_v8  ;;  %v659_v52 = vpack.c.bf16 %v461_v51, %v460_v50  ;;  %v556_v58 = vld [vmem:[%s846_s8] ss:$0 sm:$0xff] }
   0xc   :  { %626 = vmatprep.mubr.msk.f32.mxu0 %vm671_vm0, %v672_v4  ;;  %648 = vmatpush3.bf16.msra.mxu0 %v647_v26  ;;  %v557_v63 = vld [vmem:[%s847_s10] ss:$0 sm:$0xff] }
   0xd   :  { %649 = vmatprep.subr.bf16.mxu0 %v670_v0 }
  0x10   :  { %651 = vmatpush3.bf16.msra.mxu0 %v650_v29 }
  0x11   :  { %652 = vmatprep.subr.bf16.mxu0 %v670_v0 }
  0x14   :  { %654 = vmatpush3.bf16.msra.mxu0 %v653_v32 }
  0x15   :  { %655 = vmatprep.subr.bf16.mxu0 %v670_v0 }
  0x18   :  { %657 = vmatpush3.bf16.msra.mxu0 %v656_v35 }
  0xde   :  { %v120_v10 = vpop.f32.mrb[0].mxu0 }
  0xdf   :  { %v121_v11 = vadd.f32 %v549_v9, %v120_v10  ;;  %v594_v12 = vpop.f32.mrb[1].mxu0 }
  0xe1   :  { %v124_v13 = vmax.f32 %v121_v11, 0.0 }
  0xe3   :  { %596 = vmatpush3.msra.mxu1 %v124_v13 }
  0xe4   :  { %598 = vmatmul.mubr.msk.f32.vlgmr.msra.gmra.mrb[0].mxu1 %vm125_vm2, %v673_v14  ;;  %600 = vmatprep.subr.mxu1 %v672_v4 }
  0xe5   :  { %602 = vmatprep.mubr.msk.f32.mxu1 %vm671_vm0, %v672_v4 }
 0x1b7   :  { %v195_v18 = vpop.f32.mrb[0].mxu1 }
 0x1b8   :  { %v199_v19 = vmul.f32 0.125, %v195_v18  ;;  %v599_v20 = vpop.f32.mrb[1].mxu1 }
 0x1ba   :  { %v203_v21 = vrot.slane %v199_v19, %v202_v17 }
 0x1bc   :  { %v204_v22 = vsub.f32 %v124_v13, %v203_v21 }
 0x1be   :  { %v205_v23 = vmul.f32 %v204_v22, %v204_v22 }
 0x1c0   :  { %601 = vmatpush3.msra.mxu1 %v205_v23 }
 0x1c1   :  { %603 = vmatmul.mubr.msk.f32.vlgmr.msra.gmra.mrb[2].mxu1 %vm125_vm2, %v673_v14  ;;  %605 = vmatprep.subr.mxu1 %v672_v4 }
 0x1c2   :  { %607 = vmatprep.mubr.msk.f32.mxu1 %vm671_vm0, %v672_v4  ;;  %606 = vmatpush3.msra.mxu1 %v303_v36 }
 0x1c3   :  { %658 = vmatprep.subr.bf16.mxu1 %v670_v0 }
 0x1c5   :  { %608 = vmatmul.mubr.msk.f32.vlgmr.msra.gmra.mrb[4].mxu1 %vm125_vm2, %v302_v37 }
 0x1c6   :  { %637 = vmatprep.mubr.msk.f32.mxu1 %vm671_vm0, %v672_v4  ;;  %660 = vmatpush3.bf16.msra.mxu1 %v659_v52 }
 0x1c7   :  { %661 = vmatprep.subr.bf16.mxu1 %v670_v0 }
 0x1ca   :  { %663 = vmatpush3.bf16.msra.mxu1 %v662_v56 }
 0x294   :  { %v272_v38 = vpop.f32.mrb[2].mxu1 }
 0x295   :  { %v276_v39 = vmul.f32 0.125, %v272_v38  ;;  %v604_v40 = vpop.f32.mrb[3].mxu1 }
 0x297   :  { %v277_v41 = vadd.f32 1e-05, %v276_v39 }
 0x298   :  { %v373_v49 = vpop.f32.mrb[4].mxu1 }
 0x299   :  { %668 = vrsqrt.f32 %v277_v41  ;;  %v609_v53 = vpop.f32.mrb[5].mxu1 }
 0x2a3   :  { %v669_v43 = vpop.eup %668 }
 0x2a4   :  { %v280_v44 = vmul.f32 %v669_v43, %v279_v42 }
 0x2a6   :  { %v284_v45 = vrot.slane %v280_v44, %v202_v17 }
 0x2a8   :  { %v285_v47 = vmul.f32 %v284_v45, %v204_v22 }
 0x2aa   :  { %v293_v48 = vadd.f32 %v553_v46, %v285_v47 }
 0x2ac   :  { %627 = vmatmul.mubr.msk.f32.vlgmr.msra.gmra.mrb[2].mxu0 %vm377_vm3, %v293_v48 }
 0x37f   :  { %v447_v57 = vpop.f32.mrb[2].mxu0 }
 0x380   :  { %v448_v59 = vadd.f32 %v447_v57, %v373_v49  ;;  %v628_v60 = vpop.f32.mrb[3].mxu0 }
 0x382   :  { %v458_v61 = vadd.f32 %v556_v58, %v448_v59 }
 0x384   :  { %v459_v62 = vmax.f32 %v458_v61, 0.0 }
 0x386   :  { %638 = vmatmul.mubr.msk.f32.vlgmr.msra.gmra.mrb[6].mxu1 %vm50_vm1, %v459_v62 }
 0x459   :  { %v540_v0 = vpop.f32.mrb[6].mxu1 }
 0x45a   :  { %v541_v1 = vadd.f32 %v557_v63, %v540_v0  ;;  %v639_v2 = vpop.f32.mrb[7].mxu1 }
 0x45c   :  { %544 = vst [vmem:[%s848_s11] sm:$0xff] %v541_v1 }

</bundles_post_ra>
